<compile_context>
chip_gen: v7x
topology: tpu7x:2x2x1
jax: 0.10.0
libtpu: 0.0.40
codegen_flags: <defaults>
</compile_context>

<pallas_src>
import jax
import jax.numpy as jnp
from jax import lax
from jax.experimental import pallas as pl
from jax.experimental.pallas import tpu as pltpu

LANES = 128
SUBLANES = 8
CHUNK_M = 512                   # rows per in-kernel sub-chunk (keeps f32 temps small)
ACC_ROWS = 8 * SUBLANES         # 8 independent (8,128) f32 accumulators (ILP on v7x)
TARGET_BLOCK_BYTES = 4 << 20    # ~4 MiB per-input per-grid-step DMA block
VMEM_LIMIT_BYTES = 32 << 20     # 2 in x 2 buf x 4 MiB = 16 MiB + temporaries; safe on v5e..v7x


def _round_up(a, b):
    return -(-a // b) * b


def _num_core_splits():
    # v7x has 2 TensorCores per chip ("parallel" grid axes shard across them);
    # v5e / v6e have 1 TensorCore, where a core split only wastes DMA/padding.
    try:
        kind = jax.devices()[0].device_kind.lower()
    except Exception:
        return 1
    return 2 if ("v7" in kind or "7x" in kind) else 1


def _make_loss_kernel(tile_m, chunk_m, acc_rows, steps, m_valid, mask_rows):
    n_chunks = tile_m // chunk_m

    def kernel(x_ref, t_ref, o_ref):
        p = pl.program_id(0)
        j = pl.program_id(1)

        # Accumulator init: relies on the reduction axis (j) being the LAST grid
        # axis and the output block index being constant across it.
        @pl.when(j == 0)
        def _init():
            o_ref[...] = jnp.zeros_like(o_ref)

        # Logical (unclamped) first row of this block — used only for masking.
        base = (p * steps + j) * tile_m

        def chunk_sum(start, acc):
            # Upcast in-register; HBM traffic stays at the native input width.
            x = x_ref[pl.ds(start, chunk_m), :].astype(jnp.float32)
            t = t_ref[pl.ds(start, chunk_m), :].astype(jnp.float32)
            d = x - t
            sq = d * d
            if mask_rows:
                # Zero out rows beyond the logical extent (partial / duplicated
                # tail blocks). Statically elided when the grid covers exactly.
                row = base + start + lax.broadcasted_iota(
                    jnp.int32, (chunk_m, LANES), 0)
                sq = jnp.where(row < m_valid, sq, 0.0)
            # VPU-only partial reduction onto acc_rows//8 independent vregs:
            # multiple accumulator chains keep VALU latency off the critical path.
            part = jnp.sum(
                sq.reshape(chunk_m // acc_rows, acc_rows, LANES), axis=0)
            return acc + part

        acc0 = jnp.zeros((acc_rows, LANES), jnp.float32)
        if n_chunks == 1:
            acc = chunk_sum(0, acc0)
        else:
            acc = lax.fori_loop(
                0, n_chunks,
                lambda c, a: chunk_sum(pl.multiple_of(c * chunk_m, chunk_m), a),
                acc0)
        o_ref[...] += acc

    return kernel


def pallas_loss(input_arr, target_arr, size_average: bool = True):
    """Generic criterion forward: mean/sum of squared error over all elements."""
    assert input_arr.shape == target_arr.shape
    n_elems = int(input_arr.size)
    if n_elems == 0:
        # Empty-input reduction semantics: sum -> 0, mean -> nan.
        return jnp.float32(float("nan")) if size_average else jnp.float32(0.0)

    # TPU has no f64 path; fold anything wider than 32 bits down once.
    if jnp.dtype(input_arr.dtype).itemsize > 4:
        input_arr = input_arr.astype(jnp.float32)
        target_arr = target_arr.astype(jnp.float32)
    itemsize = jnp.dtype(input_arr.dtype).itemsize

    # Packed dtypes (bf16/int8) pack rows along sublanes -> row quantum 8*(4/itemsize).
    row_quantum = SUBLANES * max(1, 4 // itemsize)
    max_tile_m = max(CHUNK_M, TARGET_BLOCK_BYTES // (LANES * itemsize))

    x = jnp.ravel(input_arr)   # free (metadata-only reshape)
    t = jnp.ravel(target_arr)

    lane_rows = -(-n_elems // LANES)

    if lane_rows < CHUNK_M:
        # Tiny input: a single grid step; pad the (<256 KiB) slab so the one
        # block is exact. Zero padding is exact for squared error.
        splits = 1
        m_rows = _round_up(lane_rows, row_quantum)
        tile_m = m_rows
        chunk_m = tile_m
        acc_rows = ACC_ROWS if tile_m % ACC_ROWS == 0 else SUBLANES
    else:
        # Large input: never copy/pad the bulk. Blocks are multiples of CHUNK_M
        # rows, capped at ~4 MiB per input and at the array extent; ragged tile
        # coverage is masked in-kernel instead of padded in HBM.
        splits = _num_core_splits()
        m_rows = lane_rows
        rows_per_split = -(-m_rows // splits)
        tile_m = min(max_tile_m,
                     _round_up(rows_per_split, CHUNK_M),
                     (m_rows // CHUNK_M) * CHUNK_M)
        chunk_m = CHUNK_M
        acc_rows = ACC_ROWS

    n_target = m_rows * LANES
    if n_target != n_elems:
        # Only the tiny small-input slab and the rare lane-ragged remainder pad.
        # TODO(synk): a lane-ragged (n % 128 != 0) LARGE input still pays one full
        # jnp.pad copy; a fully copy-free path would need 1-D blocks or a
        # manual-DMA tail, not worth the complexity here.
        x = jnp.pad(x, (0, n_target - n_elems))
        t = jnp.pad(t, (0, n_target - n_elems))
    x2d = x.reshape(m_rows, LANES)
    t2d = t.reshape(m_rows, LANES)

    rows_per_split = -(-m_rows // splits)
    steps = -(-rows_per_split // tile_m)
    m_blocks = -(-m_rows // tile_m)
    last_block = m_blocks - 1
    # Mask only when the grid over-covers the rows; statically skipped otherwise.
    mask_rows = (splits * steps * tile_m) != m_rows

    # Clamp the input block index so over-coverage blocks stay in bounds; their
    # contribution is zeroed by the logical-row mask inside the kernel.
    in_map = lambda p, j: (jnp.minimum(p * steps + j, last_block), 0)

    kernel = _make_loss_kernel(tile_m, chunk_m, acc_rows, steps, m_rows, mask_rows)

    out_rows = splits * acc_rows
    cost = pl.CostEstimate(
        flops=3 * m_rows * LANES,
        transcendentals=0,
        bytes_accessed=2 * m_rows * LANES * itemsize + out_rows * LANES * 4)

    partials = pl.pallas_call(
        kernel,
        out_shape=jax.ShapeDtypeStruct((out_rows, LANES), jnp.float32),
        grid_spec=pltpu.PrefetchScalarGridSpec(
            num_scalar_prefetch=0,
            grid=(splits, steps),
            in_specs=[
                pl.BlockSpec((tile_m, LANES), in_map),
                pl.BlockSpec((tile_m, LANES), in_map),
            ],
            # One partial-sum block per parallel core split; resident across the
            # "arbitrary" reduction axis (accumulator pattern).
            out_specs=pl.BlockSpec((acc_rows, LANES), lambda p, j: (p, 0)),
        ),
        compiler_params=pltpu.CompilerParams(
            dimension_semantics=("parallel", "arbitrary"),
            vmem_limit_bytes=VMEM_LIMIT_BYTES,
        ),
        cost_estimate=cost,
    )(x2d, t2d)

    total = jnp.sum(partials)   # tiny collapse, once, outside the kernel
    if size_average:
        total = total / jnp.float32(n_elems)
    return total  # 0-dim scalar, matching PyTorch's reduced loss


if __name__ == "__main__":
    key = jax.random.PRNGKey(0)
    k1, k2, k3, k4, k5, k6 = jax.random.split(key, 6)

    # 1) NCHW segmentation-style input, f32, exactly lane-divisible (small path).
    x = jax.random.normal(k1, (2, 4, 16, 16), dtype=jnp.float32)
    t = jax.random.normal(k2, (2, 4, 16, 16), dtype=jnp.float32)
    loss_mean = pallas_loss(x, t, size_average=True)
    loss_sum = pallas_loss(x, t, size_average=False)
    jax.block_until_ready(loss_mean)
    jax.block_until_ready(loss_sum)
    assert jnp.allclose(loss_mean, jnp.mean((x - t) ** 2), rtol=1e-5, atol=1e-5)
    assert jnp.allclose(loss_sum, jnp.sum((x - t) ** 2), rtol=1e-5, atol=1e-4)

    # 2) Ragged shape (exercises the tiny lane-pad path: 210 elems, not % 128).
    xr = jax.random.normal(k3, (2, 3, 7, 5), dtype=jnp.float32)
    tr = jax.random.normal(k4, (2, 3, 7, 5), dtype=jnp.float32)
    loss_r = pallas_loss(xr, tr, size_average=True)
    jax.block_until_ready(loss_r)
    assert jnp.allclose(loss_r, jnp.mean((xr - tr) ** 2), rtol=1e-5, atol=1e-5)

    # 3) bf16 inputs (native-dtype DMA with in-kernel upcast).
    xb = x.astype(jnp.bfloat16)
    tb = t.astype(jnp.bfloat16)
    loss_b = pallas_loss(xb, tb, size_average=True)
    jax.block_until_ready(loss_b)
    ref_b = jnp.mean((xb.astype(jnp.float32) - tb.astype(jnp.float32)) ** 2)
    assert jnp.allclose(loss_b, ref_b, rtol=1e-5, atol=1e-4)

    # 4) Larger input: big path (chunked fori_loop, multi-accumulator, no pad).
    xl = jax.random.normal(k5, (8, 4, 128, 128), dtype=jnp.float32)
    tl = jax.random.normal(k6, (8, 4, 128, 128), dtype=jnp.float32)
    loss_l = pallas_loss(xl, tl, size_average=True)
    jax.block_until_ready(loss_l)
    assert jnp.allclose(loss_l, jnp.mean((xl - tl) ** 2), rtol=1e-5, atol=1e-5)

    # 5) Big path with ragged tile coverage (in-kernel row mask, no bulk pad).
    xp = jax.random.normal(k5, (1000, 128), dtype=jnp.float32)
    tp = jax.random.normal(k6, (1000, 128), dtype=jnp.float32)
    loss_p = pallas_loss(xp, tp, size_average=False)
    jax.block_until_ready(loss_p)
    assert jnp.allclose(loss_p, jnp.sum((xp - tp) ** 2), rtol=1e-5, atol=1e-2)

    print("KERNEL_OK")
</pallas_src>

<mosaic_0001>
module attributes {stable_mosaic.version = 11 : i64} {
  func.func @kernel(%arg0: i32, %arg1: i32, %arg2: memref<16x128xf32, #tpu.memory_space<vmem>>, %arg3: memref<16x128xf32, #tpu.memory_space<vmem>>, %arg4: memref<8x128xf32, #tpu.memory_space<vmem>>) attributes {dimension_semantics = [#tpu.dimension_semantics<parallel>, #tpu.dimension_semantics<arbitrary>], iteration_bounds = array<i64: 1, 1>, scalar_prefetch = 0 : i64, scratch_operands = 0 : i64, tpu.core_type = #tpu.core_type<tc>, window_params = [{transform_indices = @transform_0, window_bounds = array<i64: 16, 128>}, {transform_indices = @transform_1, window_bounds = array<i64: 16, 128>}, {transform_indices = @transform_2, window_bounds = array<i64: 8, 128>}]} {
    %c0_i32 = arith.constant 0 : i32
    %0 = arith.cmpi eq, %arg1, %c0_i32 : i32
    %1 = arith.extui %0 : i1 to i32
    %c0_i32_0 = arith.constant 0 : i32
    %2 = arith.cmpi ne, %1, %c0_i32_0 : i32
    scf.if %2 {
      %cst_9 = arith.constant 0.000000e+00 : f32
      %14 = vector.broadcast %cst_9 : f32 to vector<8x128xf32>
      %c0_10 = arith.constant 0 : index
      %c0_11 = arith.constant 0 : index
      %15 = vector.load %arg4[%c0_10, %c0_11] : memref<8x128xf32, #tpu.memory_space<vmem>>, vector<8x128xf32>
      tpu.vector_store %arg4[%c0_10, %c0_11], %14 {strides = array<i32>} : memref<8x128xf32, #tpu.memory_space<vmem>>, vector<8x128xf32>,
    } else {
    }
    %cst = arith.constant 0.000000e+00 : f32
    %3 = vector.broadcast %cst : f32 to vector<8x128xf32>
    %c0 = arith.constant 0 : index
    %c0_1 = arith.constant 0 : index
    %4 = vector.load %arg2[%c0, %c0_1] : memref<16x128xf32, #tpu.memory_space<vmem>>, vector<16x128xf32>
    %c0_2 = arith.constant 0 : index
    %c0_3 = arith.constant 0 : index
    %5 = vector.load %arg3[%c0_2, %c0_3] : memref<16x128xf32, #tpu.memory_space<vmem>>, vector<16x128xf32>
    %6 = arith.subf %4, %5 : vector<16x128xf32>
    %7 = arith.mulf %6, %6 : vector<16x128xf32>
    %8 = vector.shape_cast %7 : vector<16x128xf32> to vector<2x8x128xf32>
    %cst_4 = arith.constant dense<0.000000e+00> : vector<8x128xf32>
    %9 = vector.multi_reduction <add>, %8, %cst_4 [0] : vector<2x8x128xf32> to vector<8x128xf32>
    %10 = arith.addf %3, %9 : vector<8x128xf32>
    %c0_5 = arith.constant 0 : index
    %c0_6 = arith.constant 0 : index
    %11 = vector.load %arg4[%c0_5, %c0_6] : memref<8x128xf32, #tpu.memory_space<vmem>>, vector<8x128xf32>
    %12 = arith.addf %11, %10 : vector<8x128xf32>
    %c0_7 = arith.constant 0 : index
    %c0_8 = arith.constant 0 : index
    %13 = vector.load %arg4[%c0_7, %c0_8] : memref<8x128xf32, #tpu.memory_space<vmem>>, vector<8x128xf32>
    tpu.vector_store %arg4[%c0_7, %c0_8], %12 {strides = array<i32>} : memref<8x128xf32, #tpu.memory_space<vmem>>, vector<8x128xf32>,
    return
  }
  func.func @transform_0(%arg0: i32, %arg1: i32) -> (i32, i32) {
    %c1_i32 = arith.constant 1 : i32
    %0 = arith.muli %arg0, %c1_i32 : i32
    %1 = arith.addi %0, %arg1 : i32
    %c0_i32 = arith.constant 0 : i32
    %2 = arith.minsi %1, %c0_i32 : i32
    %c0_i32_0 = arith.constant 0 : i32
    %c0_i32_1 = arith.constant 0 : i32
    return %2, %c0_i32_0 : i32, i32
  }
  func.func @transform_1(%arg0: i32, %arg1: i32) -> (i32, i32) {
    %c1_i32 = arith.constant 1 : i32
    %0 = arith.muli %arg0, %c1_i32 : i32
    %1 = arith.addi %0, %arg1 : i32
    %c0_i32 = arith.constant 0 : i32
    %2 = arith.minsi %1, %c0_i32 : i32
    %c0_i32_0 = arith.constant 0 : i32
    %c0_i32_1 = arith.constant 0 : i32
    return %2, %c0_i32_0 : i32, i32
  }
  func.func @transform_2(%arg0: i32, %arg1: i32) -> (i32, i32) {
    %c0_i32 = arith.constant 0 : i32
    %c0_i32_0 = arith.constant 0 : i32
    return %arg0, %c0_i32 : i32, i32
  }
}

</mosaic_0001>

<bundles_post_ra>
// kernel: tpu_custom_call.1
= control target key start
LH: loop header
LB: loop body
LE: loop exit
PB: predicated region body
PF: predicated region fallthrough
CT: control target
= control target key end

     0   :  { %7 = vsyncpa [#allocation3], 0  ;;  %s232_s0 = inlined_call_operand.hbm [shape: f32[16,128], index: 0, kind: input, shape index: {}]   ;;  %s233_s1 = inlined_call_operand.hbm [shape: f32[16,128], index: 1, kind: input, shape index: {}]   ;;  %s234_s2 = inlined_call_operand.hbm [shape: f32[8,128], index: 2, kind: output, shape index: {}]  }
   0x1   :  { %8 = vsyncpa [#allocation6], 0 }
   0x2   :  { %9 = vsyncpa [#allocation4], 0  ;;  %s176_s9 = smov [#allocation2]   ;;  %s104_s13 = scalar_lea.hbm %s232_s0, 256 }
   0x3   :  { %s21_s10 = sshll.u32 %s176_s9, 4  ;;  %p105_p0 = scmp.ne.s32.totalorder %s232_s0, %s104_s13  ;;  %s22_s10 = int_to_ptr.vmem [resolvable:$true] %s21_s10 }
   0x4   :  { %p108_p1 = scmp.lt.u32.totalorder %s104_s13, %s232_s0 }
   0x6   :  { %p110_p2 = pnand %p108_p1, %p105_p0 }
   0x8   :  { %113 = shalt.err (!%p110_p2)
}
   0x9   :  { %s114_s18 = scalar_lea.vmem %s22_s10, 256  ;;  %p119_p4 = scmp.lt.s32.totalorder %s22_s10, %s22_s10 }
   0xa   :  { %p115_p3 = scmp.ne.s32.totalorder %s22_s10, %s114_s18  ;;  %p120_p5 = scmp.lt.s32.totalorder %s114_s18, %s114_s18 }
   0xc   :  { %p121_p6 = por %p120_p5, %p119_p4 }
   0xe   :  { %p122_p7 = pnand %p121_p6, %p115_p3 }
  0x10   :  { %125 = shalt.err (!%p122_p7)
}
  0x11   :  { %s177_s19 = smov 128   ;;  %s178_s20 = smov 8  }
  0x12   :  { %27 = dma.hbm_to_vmem [thread:$0]  %s232_s0, 256, %s22_s10, [#allocation3], %s177_s19, %s177_s19, %s178_s20  }
  0x13   :  { %s179_s23 = smov [#allocation5]   ;;  %s126_s27 = scalar_lea.hbm %s233_s1, 256 }
  0x14   :  { %s39_s24 = sshll.u32 %s179_s23, 4  ;;  %p127_p8 = scmp.ne.s32.totalorder %s233_s1, %s126_s27  ;;  %s40_s24 = int_to_ptr.vmem [resolvable:$true] %s39_s24 }
  0x15   :  { %p130_p9 = scmp.lt.u32.totalorder %s126_s27, %s233_s1 }
  0x17   :  { %p132_p10 = pnand %p130_p9, %p127_p8 }
  0x19   :  { %135 = shalt.err (!%p132_p10)
}
  0x1a   :  { %s136_s4 = scalar_lea.vmem %s40_s24, 256  ;;  %p141_p12 = scmp.lt.s32.totalorder %s40_s24, %s40_s24 }
  0x1b   :  { %p137_p11 = scmp.ne.s32.totalorder %s40_s24, %s136_s4  ;;  %p142_p13 = scmp.lt.s32.totalorder %s136_s4, %s136_s4 }
  0x1d   :  { %p143_p0 = por %p142_p13, %p141_p12 }
  0x1f   :  { %p144_p1 = pnand %p143_p0, %p137_p11 }
  0x21   :  { %147 = shalt.err (!%p144_p1)
}
  0x22   :  { %45 = dma.hbm_to_vmem [thread:$0]  %s233_s1, 256, %s40_s24, [#allocation6], %s177_s19, %s177_s19, %s178_s20  }
  0x23   :  { %170 = dma.done.wait [#allocation3], 256  }
  0x24   :  { %171 = vsyncadd [#allocation3], 4294967040 }
  0x25   :  { %172 = dma.done.wait [#allocation6], 256  }
  0x26   :  { %173 = vsyncadd [#allocation6], 4294967040  ;;  %v65_v0 = vld [vmem:[#allocation2] sm:$0xff]  ;;  %v66_v1 = vld [vmem:[#allocation2 + $0x8] sm:$0xff]  ;;  %s180_s6 = smov [#allocation7]  }
  0x27   :  { %v67_v2 = vld [vmem:[#allocation5] sm:$0xff]  ;;  %v68_v3 = vld [vmem:[#allocation5 + $0x8] sm:$0xff]  ;;  %s84_s7 = sshll.u32 %s180_s6, 4  ;;  %s85_s7 = int_to_ptr.vmem [resolvable:$true] %s84_s7 }
  0x28   :  { %v69_v4 = vsub.f32 %v65_v0, %v67_v2  ;;  %v70_v5 = vsub.f32 %v66_v1, %v68_v3  ;;  %s148_s8 = scalar_lea.vmem %s85_s7, 128  ;;  %p153_p3 = scmp.lt.s32.totalorder %s85_s7, %s85_s7 }
  0x29   :  { %p149_p2 = scmp.ne.s32.totalorder %s85_s7, %s148_s8  ;;  %p154_p4 = scmp.lt.s32.totalorder %s148_s8, %s148_s8 }
  0x2a   :  { %v71_v6 = vmul.f32 %v69_v4, %v69_v4  ;;  %v72_v7 = vmul.f32 %v70_v5, %v70_v5 }
  0x2b   :  { %p155_p5 = por %p154_p4, %p153_p3 }
  0x2c   :  { %v73_v8 = vadd.f32 %v72_v7, %v71_v6 }
  0x2d   :  { %p156_p6 = pnand %p155_p5, %p149_p2 }
  0x2e   :  { %77 = vst [vmem:[#allocation7] sm:$0xff] %v73_v8 }
  0x2f   :  { %159 = shalt.err (!%p156_p6)
}
  0x30   :  { %s160_s10 = scalar_lea.hbm %s234_s2, 128 }
  0x31   :  { %p161_p7 = scmp.ne.s32.totalorder %s234_s2, %s160_s10  ;;  %p164_p8 = scmp.lt.u32.totalorder %s160_s10, %s234_s2 }
  0x33   :  { %p166_p9 = pnand %p164_p8, %p161_p7 }
  0x35   :  { %169 = shalt.err (!%p166_p9)
}
  0x36   :  { %87 = dma.vmem_to_hbm [thread:$0]  %s85_s7, 128, %s234_s2, [#allocation4]  }
  0x37   :  { %174 = dma.done.wait [#allocation4], 128  }
  0x38   :  { %175 = vsyncadd [#allocation4], 4294967168 }
  0x39   :  { %91 = vsyncpa [#allocation3], 1 }
  0x3a   :  { %92 = vsyncpa [#allocation6], 1 }
  0x3b   :  { %93 = vsyncpa [#allocation4], 1 }

</bundles_post_ra>
